<compile_context>
chip_gen: v6e
topology: v6e:2x2x1
jax: 0.10.0
libtpu: 0.0.40
codegen_flags: <defaults>
</compile_context>

<pallas_src>
import jax
import jax.numpy as jnp
from jax.experimental import pallas as pl
from jax.experimental.pallas import tpu as pltpu

IN_FEATURES = 28 * 28   # 784
HIDDEN = 256
OUT_FEATURES = 10
OUT_PAD = 128           # lane-dense padded output width (unmasked vst)


def _round_up(n, m):
    return ((n + m - 1) // m) * m


def _cdiv(a, b):
    return (a + b - 1) // b


def _pick_tb_max():
    # v7x: 2 TensorCores share 64 MiB VMEM -> keep tiles at 512 so the
    # "parallel" batch axis can split across both cores for large B.
    # Single-TC generations (v5e/v6e): fatter tiles amortize per-grid-step
    # pipeline overhead; VMEM is nowhere near binding at these sizes.
    try:
        kind = jax.devices()[0].device_kind.lower()
    except Exception:
        return 512
    return 512 if "v7" in kind else 1024


TB_MAX = _pick_tb_max()


def mlp_kernel(x_ref, w1_ref, b1_ref, w2_ref, b2_ref, o_ref):
    # x_ref:  (TB, 784)  f32   (cast to bf16 in-kernel on the VPU)
    # w1_ref: (784, 256) bf16  b1_ref: (1, 256) f32
    # w2_ref: (256, 128) bf16  b2_ref: (1, 128) f32 (cols 10..127 are zero)
    # o_ref:  (TB, 128)  f32
    x = x_ref[...].astype(jnp.bfloat16)            # VPU cast; hidden under DMA slack
    h = jnp.dot(x, w1_ref[...], preferred_element_type=jnp.float32)
    h = jnp.maximum(h + b1_ref[...], 0.0)          # bias + ReLU in f32
    # Dropout(p=0) is the identity in both train and eval; nothing to emit.
    hb = h.astype(jnp.bfloat16)                    # bf16 operand for 2nd MXU pass
    logits = jnp.dot(hb, w2_ref[...], preferred_element_type=jnp.float32)
    o_ref[...] = logits + b2_ref[...]


@jax.jit
def simple_mnist_forward(x_nchw, w1, b1, w2, b2):
    """x_nchw: (B, 1, 28, 28) f32. Weights stored (in, out). Returns (B, 10) f32."""
    B = x_nchw.shape[0]
    x = x_nchw.reshape(B, IN_FEATURES)             # nn.Flatten on NCHW, row-major

    # ---- layout / dtype prep for the (small) weights, wrapper-side ----
    w1_bf = w1.astype(jnp.bfloat16)
    w2_pad = jnp.zeros((HIDDEN, OUT_PAD), jnp.float32).at[:, :OUT_FEATURES].set(w2)
    b2_pad = jnp.zeros((1, OUT_PAD), jnp.float32).at[:, :OUT_FEATURES].set(b2)
    w2_bf = w2_pad.astype(jnp.bfloat16)
    b1_2d = b1.reshape(1, HIDDEN).astype(jnp.float32)

    # ---- adaptive batch tiling: bound padding waste, keep >=8 sublanes ----
    n_tiles = max(1, _cdiv(B, TB_MAX))
    tb = min(TB_MAX, _round_up(_cdiv(B, n_tiles), 8))
    b_pad = _round_up(B, tb)
    if b_pad != B:
        x = jnp.pad(x, ((0, b_pad - B), (0, 0)))   # only pass over x (f32) if needed
    grid = (b_pad // tb,)

    flops = 2 * b_pad * (IN_FEATURES * HIDDEN + HIDDEN * OUT_PAD)
    bytes_accessed = (
        b_pad * IN_FEATURES * 4              # f32 input (cast in-kernel)
        + (w1_bf.size + w2_bf.size) * 2      # bf16 weights
        + (b1_2d.size + b2_pad.size) * 4     # f32 biases
        + b_pad * OUT_PAD * 4                # f32 output slab
    )

    out = pl.pallas_call(
        mlp_kernel,
        out_shape=jax.ShapeDtypeStruct((b_pad, OUT_PAD), jnp.float32),
        grid=grid,
        in_specs=[
            pl.BlockSpec((tb, IN_FEATURES), lambda i: (i, 0)),      # x: streamed
            pl.BlockSpec((IN_FEATURES, HIDDEN), lambda i: (0, 0)),  # w1: resident
            pl.BlockSpec((1, HIDDEN), lambda i: (0, 0)),            # b1: resident
            pl.BlockSpec((HIDDEN, OUT_PAD), lambda i: (0, 0)),      # w2: resident
            pl.BlockSpec((1, OUT_PAD), lambda i: (0, 0)),           # b2: resident
        ],
        out_specs=pl.BlockSpec((tb, OUT_PAD), lambda i: (i, 0)),
        compiler_params=pltpu.CompilerParams(
            dimension_semantics=("parallel",)),                     # v7x: split batch over 2 TCs
        cost_estimate=pl.CostEstimate(
            flops=flops, transcendentals=0, bytes_accessed=bytes_accessed),
    )(x, w1_bf, b1_2d, w2_bf, b2_pad)

    return out[:B, :OUT_FEATURES]


def init_params(key):
    # Deterministic init mimicking PyTorch nn.Linear default:
    # U(-1/sqrt(fan_in), 1/sqrt(fan_in)) for both weight and bias.
    k1, k2, k3, k4 = jax.random.split(key, 4)
    bound1 = 1.0 / jnp.sqrt(IN_FEATURES)
    bound2 = 1.0 / jnp.sqrt(HIDDEN)
    # Stored as (in, out) so the kernel computes x @ W (transpose of torch's (out, in)).
    w1 = jax.random.uniform(k1, (IN_FEATURES, HIDDEN), jnp.float32, -bound1, bound1)
    b1 = jax.random.uniform(k2, (HIDDEN,), jnp.float32, -bound1, bound1)
    w2 = jax.random.uniform(k3, (HIDDEN, OUT_FEATURES), jnp.float32, -bound2, bound2)
    b2 = jax.random.uniform(k4, (OUT_FEATURES,), jnp.float32, -bound2, bound2)
    return w1, b1, w2, b2


if __name__ == "__main__":
    key = jax.random.PRNGKey(0)
    kx, kp = jax.random.split(key)

    # MNIST-like input: batch=2, NCHW (2, 1, 28, 28)
    x = jax.random.normal(kx, (2, 1, 28, 28), jnp.float32)
    w1, b1, w2, b2 = init_params(kp)

    logits = simple_mnist_forward(x, w1, b1, w2, b2)
    logits = jax.block_until_ready(logits)
    assert logits.shape == (2, OUT_FEATURES)

    # Reference following the same bf16-operand / f32-accumulate precision path.
    xf = x.reshape(x.shape[0], -1).astype(jnp.bfloat16)
    h_ref = jnp.dot(xf, w1.astype(jnp.bfloat16),
                    preferred_element_type=jnp.float32) + b1
    h_ref = jnp.maximum(h_ref, 0.0).astype(jnp.bfloat16)
    ref = jnp.dot(h_ref, w2.astype(jnp.bfloat16),
                  preferred_element_type=jnp.float32) + b2
    assert jnp.allclose(logits, ref, atol=1e-3, rtol=1e-3)

    # Loose sanity check against the full-f32 math (bf16 quantization error only).
    ref_f32 = jnp.maximum(x.reshape(2, -1) @ w1 + b1, 0.0) @ w2 + b2
    assert jnp.allclose(logits, ref_f32, atol=5e-2, rtol=5e-2)

    print("KERNEL_OK")
</pallas_src>

<mosaic_0001>
module attributes {stable_mosaic.version = 11 : i64} {
  func.func @mlp_kernel(%arg0: i32, %arg1: memref<8x784xf32, #tpu.memory_space<vmem>>, %arg2: memref<784x256xbf16, #tpu.memory_space<vmem>>, %arg3: memref<1x256xf32, #tpu.memory_space<vmem>>, %arg4: memref<256x128xbf16, #tpu.memory_space<vmem>>, %arg5: memref<1x128xf32, #tpu.memory_space<vmem>>, %arg6: memref<8x128xf32, #tpu.memory_space<vmem>>) attributes {dimension_semantics = [#tpu.dimension_semantics<parallel>], iteration_bounds = array<i64: 1>, scalar_prefetch = 0 : i64, scratch_operands = 0 : i64, tpu.core_type = #tpu.core_type<tc>, window_params = [{transform_indices = @transform_0, window_bounds = array<i64: 8, 784>}, {pipeline_mode = #tpu.pipeline_mode<synchronous>, transform_indices = @transform_1, window_bounds = array<i64: 784, 256>}, {pipeline_mode = #tpu.pipeline_mode<synchronous>, transform_indices = @transform_2, window_bounds = array<i64: 1, 256>}, {pipeline_mode = #tpu.pipeline_mode<synchronous>, transform_indices = @transform_3, window_bounds = array<i64: 256, 128>}, {pipeline_mode = #tpu.pipeline_mode<synchronous>, transform_indices = @transform_4, window_bounds = array<i64: 1, 128>}, {transform_indices = @transform_5, window_bounds = array<i64: 8, 128>}]} {
    %c0 = arith.constant 0 : index
    %c0_0 = arith.constant 0 : index
    %0 = vector.load %arg1[%c0, %c0_0] : memref<8x784xf32, #tpu.memory_space<vmem>>, vector<8x784xf32>
    %1 = arith.truncf %0 : vector<8x784xf32> to vector<8x784xbf16>
    %c0_1 = arith.constant 0 : index
    %c0_2 = arith.constant 0 : index
    %2 = vector.load %arg2[%c0_1, %c0_2] : memref<784x256xbf16, #tpu.memory_space<vmem>>, vector<784x256xbf16>
    %cst = arith.constant dense<0.000000e+00> : vector<8x256xf32>
    %3 = tpu.matmul %1, %2, %cst {dimension_numbers = #tpu.dot_dimension_numbers<[1], [0], [0], [1], [0, 0, 1, 1], [], []>} : vector<8x784xbf16>, vector<784x256xbf16>, vector<8x256xf32> -> vector<8x256xf32>
    %c0_3 = arith.constant 0 : index
    %c0_4 = arith.constant 0 : index
    %4 = vector.load %arg3[%c0_3, %c0_4] : memref<1x256xf32, #tpu.memory_space<vmem>>, vector<1x256xf32>
    %5 = vector.broadcast %4 : vector<1x256xf32> to vector<8x256xf32>
    %6 = arith.addf %3, %5 : vector<8x256xf32>
    %cst_5 = arith.constant 0.000000e+00 : f32
    %7 = vector.broadcast %cst_5 : f32 to vector<8x256xf32>
    %8 = arith.maximumf %6, %7 : vector<8x256xf32>
    %9 = arith.truncf %8 : vector<8x256xf32> to vector<8x256xbf16>
    %c0_6 = arith.constant 0 : index
    %c0_7 = arith.constant 0 : index
    %10 = vector.load %arg4[%c0_6, %c0_7] : memref<256x128xbf16, #tpu.memory_space<vmem>>, vector<256x128xbf16>
    %cst_8 = arith.constant dense<0.000000e+00> : vector<8x128xf32>
    %11 = tpu.matmul %9, %10, %cst_8 {dimension_numbers = #tpu.dot_dimension_numbers<[1], [0], [0], [1], [0, 0, 1, 1], [], []>} : vector<8x256xbf16>, vector<256x128xbf16>, vector<8x128xf32> -> vector<8x128xf32>
    %c0_9 = arith.constant 0 : index
    %c0_10 = arith.constant 0 : index
    %12 = vector.load %arg5[%c0_9, %c0_10] : memref<1x128xf32, #tpu.memory_space<vmem>>, vector<1x128xf32>
    %13 = vector.broadcast %12 : vector<1x128xf32> to vector<8x128xf32>
    %14 = arith.addf %11, %13 : vector<8x128xf32>
    %c0_11 = arith.constant 0 : index
    %c0_12 = arith.constant 0 : index
    %15 = vector.load %arg6[%c0_11, %c0_12] : memref<8x128xf32, #tpu.memory_space<vmem>>, vector<8x128xf32>
    tpu.vector_store %arg6[%c0_11, %c0_12], %14 {strides = array<i32>} : memref<8x128xf32, #tpu.memory_space<vmem>>, vector<8x128xf32>,
    return
  }
  func.func @transform_0(%arg0: i32) -> (i32, i32) {
    %c0_i32 = arith.constant 0 : i32
    %c0_i32_0 = arith.constant 0 : i32
    return %arg0, %c0_i32 : i32, i32
  }
  func.func @transform_1(%arg0: i32) -> (i32, i32) {
    %c0_i32 = arith.constant 0 : i32
    %c0_i32_0 = arith.constant 0 : i32
    %c0_i32_1 = arith.constant 0 : i32
    return %c0_i32, %c0_i32_0 : i32, i32
  }
  func.func @transform_2(%arg0: i32) -> (i32, i32) {
    %c0_i32 = arith.constant 0 : i32
    %c0_i32_0 = arith.constant 0 : i32
    %c0_i32_1 = arith.constant 0 : i32
    return %c0_i32, %c0_i32_0 : i32, i32
  }
  func.func @transform_3(%arg0: i32) -> (i32, i32) {
    %c0_i32 = arith.constant 0 : i32
    %c0_i32_0 = arith.constant 0 : i32
    %c0_i32_1 = arith.constant 0 : i32
    return %c0_i32, %c0_i32_0 : i32, i32
  }
  func.func @transform_4(%arg0: i32) -> (i32, i32) {
    %c0_i32 = arith.constant 0 : i32
    %c0_i32_0 = arith.constant 0 : i32
    %c0_i32_1 = arith.constant 0 : i32
    return %c0_i32, %c0_i32_0 : i32, i32
  }
  func.func @transform_5(%arg0: i32) -> (i32, i32) {
    %c0_i32 = arith.constant 0 : i32
    %c0_i32_0 = arith.constant 0 : i32
    return %arg0, %c0_i32 : i32, i32
  }
}

</mosaic_0001>

<bundles_post_ra>
// kernel: simple_mnist_forward.1
= control target key start
LH: loop header
LB: loop body
LE: loop exit
PB: predicated region body
PF: predicated region fallthrough
CT: control target
= control target key end

     0   :  { %vm635_vm0 = vcmask 130048   ;;  %s1692_s1 = inlined_call_operand.vmem [shape: bf16[784,256], index: 1, kind: input, shape index: {}]   ;;  %s1693_s0 = inlined_call_operand.vmem [shape: f32[8,784], index: 0, kind: input, shape index: {}]   ;;  %s1694_s3 = inlined_call_operand.vmem [shape: bf16[256,128], index: 3, kind: input, shape index: {}]   ;;  %s1695_s2 = inlined_call_operand.vmem [shape: f32[1,256], index: 2, kind: input, shape index: {}]   ;;  %s1696_s4 = inlined_call_operand.vmem [shape: f32[1,128], index: 4, kind: input, shape index: {}]   ;;  %s1697_s5 = inlined_call_operand.vmem [shape: f32[8,128], index: 5, kind: output, shape index: {}]  }
   0x1   :  { %v1126_v0 = vld [vmem:[%s1692_s1 + $0x74] ss:$8 sps:$4 sm:$0xff]   ;;  %v1128_v1 = vld [vmem:[%s1692_s1 + $0x70] ss:$8 sps:$4 sm:$0xff]   ;;  %v1132_v4 = vld [vmem:[%s1692_s1 + $0x64] ss:$8 sps:$4 sm:$0xff]  }
   0x2   :  { %639 = vmatprep.subr.bf16.mxu0 %v1126_v0  ;;  %v1129_v2 = vld [vmem:[%s1692_s1 + $0x174] ss:$8 sps:$4 sm:$0xff]   ;;  %v1131_v3 = vld [vmem:[%s1692_s1 + $0x170] ss:$8 sps:$4 sm:$0xff]   ;;  %v1134_v5 = vld [vmem:[%s1692_s1 + $0x60] ss:$8 sps:$4 sm:$0xff]  }
   0x3   :  { %640 = vmatpush1.bf16.msra.mxu0 %v1128_v1  ;;  %680 = vmatprep.subr.bf16.mxu1 %v1129_v2  ;;  %v1135_v6 = vld [vmem:[%s1692_s1 + $0x164] ss:$8 sps:$4 sm:$0xff]   ;;  %v1137_v7 = vld [vmem:[%s1692_s1 + $0x160] ss:$8 sps:$4 sm:$0xff]   ;;  %v1138_v8 = vld [vmem:[%s1692_s1 + $0x54] ss:$8 sps:$4 sm:$0xff]  }
   0x4   :  { %681 = vmatpush1.bf16.msra.mxu1 %v1131_v3  ;;  %641 = vmatprep.subr.bf16.mxu0 %v1132_v4  ;;  %v1140_v9 = vld [vmem:[%s1692_s1 + $0x50] ss:$8 sps:$4 sm:$0xff]   ;;  %v1141_v10 = vld [vmem:[%s1692_s1 + $0x154] ss:$8 sps:$4 sm:$0xff]   ;;  %v1144_v11 = vld [vmem:[%s1692_s1 + $0x44] ss:$8 sps:$4 sm:$0xff]  }
   0x5   :  { %682 = vmatprep.subr.bf16.mxu1 %v1135_v6  ;;  %v1143_v12 = vld [vmem:[%s1692_s1 + $0x150] ss:$8 sps:$4 sm:$0xff]   ;;  %v1147_v13 = vld [vmem:[%s1692_s1 + $0x144] ss:$8 sps:$4 sm:$0xff]   ;;  %v1146_v14 = vld [vmem:[%s1692_s1 + $0x40] ss:$8 sps:$4 sm:$0xff]  }
   0x6   :  { %v1150_v15 = vld [vmem:[%s1692_s1 + $0x34] ss:$8 sps:$4 sm:$0xff]   ;;  %v1149_v16 = vld [vmem:[%s1692_s1 + $0x140] ss:$8 sps:$4 sm:$0xff]   ;;  %v1152_v18 = vld [vmem:[%s1692_s1 + $0x30] ss:$8 sps:$4 sm:$0xff]  }
   0x7   :  { %642 = vmatpush1.bf16.msra.mxu0 %v1134_v5  ;;  %v1153_v17 = vld [vmem:[%s1692_s1 + $0x134] ss:$8 sps:$4 sm:$0xff]   ;;  %v1156_v19 = vld [vmem:[%s1692_s1 + $0x24] ss:$8 sps:$4 sm:$0xff]   ;;  %v1155_v20 = vld [vmem:[%s1692_s1 + $0x130] ss:$8 sps:$4 sm:$0xff]  }
   0x8   :  { %643 = vmatprep.subr.bf16.mxu0 %v1138_v8  ;;  %683 = vmatpush1.bf16.msra.mxu1 %v1137_v7  ;;  %v1159_v21 = vld [vmem:[%s1692_s1 + $0x124] ss:$8 sps:$4 sm:$0xff]   ;;  %v1158_v22 = vld [vmem:[%s1692_s1 + $0x20] ss:$8 sps:$4 sm:$0xff]   ;;  %v1162_v23 = vld [vmem:[%s1692_s1 + $0x14] ss:$8 sps:$4 sm:$0xff]  }
   0x9   :  { %684 = vmatprep.subr.bf16.mxu1 %v1141_v10  ;;  %v1161_v24 = vld [vmem:[%s1692_s1 + $0x120] ss:$8 sps:$4 sm:$0xff]   ;;  %v1165_v25 = vld [vmem:[%s1692_s1 + $0x114] ss:$8 sps:$4 sm:$0xff]   ;;  %v1164_v26 = vld [vmem:[%s1692_s1 + $0x10] ss:$8 sps:$4 sm:$0xff]  }
   0xa   :  { %v1168_v27 = vld [vmem:[%s1692_s1 + $0x4] ss:$8 sps:$4 sm:$0xff]   ;;  %v1167_v28 = vld [vmem:[%s1692_s1 + $0x110] ss:$8 sps:$4 sm:$0xff]   ;;  %v1170_v30 = vld [vmem:[%s1692_s1] ss:$8 sps:$4 sm:$0xff]  }
   0xb   :  { %644 = vmatpush1.bf16.msra.mxu0 %v1140_v9  ;;  %v1171_v29 = vld [vmem:[%s1692_s1 + $0x104] ss:$8 sps:$4 sm:$0xff]   ;;  %v1174_v31 = vld [vmem:[%s1692_s1 + $0xf4] ss:$8 sps:$4 sm:$0xff]   ;;  %v1173_v32 = vld [vmem:[%s1692_s1 + $0x100] ss:$8 sps:$4 sm:$0xff]  }
   0xc   :  { %645 = vmatprep.subr.bf16.mxu0 %v1144_v11  ;;  %685 = vmatpush1.bf16.msra.mxu1 %v1143_v12  ;;  %v1177_v33 = vld [vmem:[%s1692_s1 + $0x1f4] ss:$8 sps:$4 sm:$0xff]   ;;  %v1176_v34 = vld [vmem:[%s1692_s1 + $0xf0] ss:$8 sps:$4 sm:$0xff]   ;;  %v1180_v35 = vld [vmem:[%s1692_s1 + $0xe4] ss:$8 sps:$4 sm:$0xff]  }
   0xd   :  { %686 = vmatprep.subr.bf16.mxu1 %v1147_v13  ;;  %v1179_v36 = vld [vmem:[%s1692_s1 + $0x1f0] ss:$8 sps:$4 sm:$0xff]   ;;  %v1183_v37 = vld [vmem:[%s1692_s1 + $0x1e4] ss:$8 sps:$4 sm:$0xff]   ;;  %v1182_v38 = vld [vmem:[%s1692_s1 + $0xe0] ss:$8 sps:$4 sm:$0xff]  }
   0xe   :  { %v1186_v39 = vld [vmem:[%s1692_s1 + $0xd4] ss:$8 sps:$4 sm:$0xff]   ;;  %v1185_v40 = vld [vmem:[%s1692_s1 + $0x1e0] ss:$8 sps:$4 sm:$0xff]   ;;  %v1188_v42 = vld [vmem:[%s1692_s1 + $0xd0] ss:$8 sps:$4 sm:$0xff]  }
   0xf   :  { %646 = vmatpush1.bf16.msra.mxu0 %v1146_v14  ;;  %v1189_v41 = vld [vmem:[%s1692_s1 + $0x1d4] ss:$8 sps:$4 sm:$0xff]   ;;  %v1192_v43 = vld [vmem:[%s1692_s1 + $0xc4] ss:$8 sps:$4 sm:$0xff]   ;;  %v1191_v44 = vld [vmem:[%s1692_s1 + $0x1d0] ss:$8 sps:$4 sm:$0xff]  }
  0x10   :  { %647 = vmatprep.subr.bf16.mxu0 %v1150_v15  ;;  %687 = vmatpush1.bf16.msra.mxu1 %v1149_v16  ;;  %v1195_v45 = vld [vmem:[%s1692_s1 + $0x1c4] ss:$8 sps:$4 sm:$0xff]   ;;  %v1194_v47 = vld [vmem:[%s1692_s1 + $0xc0] ss:$8 sps:$4 sm:$0xff]   ;;  %v1198_v49 = vld [vmem:[%s1692_s1 + $0xb4] ss:$8 sps:$4 sm:$0xff]  }
  0x11   :  { %688 = vmatprep.subr.bf16.mxu1 %v1153_v17  ;;  %v22_v46 = vld [vmem:[%s1693_s0 + $0x8] sm:$0xff]  ;;  %v24_v50 = vld [vmem:[%s1693_s0 + $0x18] sm:$0xff]  ;;  %v21_v4 = vld [vmem:[%s1693_s0] sm:$0xff]  ;;  %v1289_v17 = vmov 0  }
  0x12   :  { %v29_v48 = vpack.c.bf16 %v22_v46, %v22_v46  ;;  %v1197_v51 = vld [vmem:[%s1692_s1 + $0x1c0] ss:$8 sps:$4 sm:$0xff]   ;;  %v31_v52 = vpack.c.bf16 %v24_v50, %v24_v50  ;;  %v1201_v53 = vld [vmem:[%s1692_s1 + $0x1b4] ss:$8 sps:$4 sm:$0xff]   ;;  %v1200_v54 = vld [vmem:[%s1692_s1 + $0xb0] ss:$8 sps:$4 sm:$0xff]   ;;  %v28_v7 = vpack.c.bf16 %v21_v4, %v21_v4 }
  0x13   :  { %648 = vmatpush1.bf16.msra.mxu0 %v1152_v18  ;;  %v1204_v55 = vld [vmem:[%s1692_s1 + $0xa4] ss:$8 sps:$4 sm:$0xff]   ;;  %v1203_v56 = vld [vmem:[%s1692_s1 + $0x1b0] ss:$8 sps:$4 sm:$0xff]   ;;  %v1206_v58 = vld [vmem:[%s1692_s1 + $0xa0] ss:$8 sps:$4 sm:$0xff]  }
  0x14   :  { %649 = vmatprep.subr.bf16.mxu0 %v1156_v19  ;;  %689 = vmatpush1.bf16.msra.mxu1 %v1155_v20  ;;  %v1207_v57 = vld [vmem:[%s1692_s1 + $0x1a4] ss:$8 sps:$4 sm:$0xff]   ;;  %v1210_v59 = vld [vmem:[%s1692_s1 + $0x94] ss:$8 sps:$4 sm:$0xff]   ;;  %v1209_v60 = vld [vmem:[%s1692_s1 + $0x1a0] ss:$8 sps:$4 sm:$0xff]  }
  0x15   :  { %690 = vmatprep.subr.bf16.mxu1 %v1159_v21  ;;  %671 = vmatprep.mubr.bf16.mxu0 %v29_v48  ;;  %v1213_v61 = vld [vmem:[%s1692_s1 + $0x194] ss:$8 sps:$4 sm:$0xff]   ;;  %v1212_v62 = vld [vmem:[%s1692_s1 + $0x90] ss:$8 sps:$4 sm:$0xff]   ;;  %v1216_v63 = vld [vmem:[%s1692_s1 + $0x84] ss:$8 sps:$4 sm:$0xff]  }
  0x16   :  { %712 = vmatprep.mubr.bf16.mxu1 %v31_v52  ;;  %v1215_v0 = vld [vmem:[%s1692_s1 + $0x190] ss:$8 sps:$4 sm:$0xff]   ;;  %v1218_v1 = vld [vmem:[%s1692_s1 + $0x80] ss:$8 sps:$4 sm:$0xff]   ;;  %v1219_v2 = vld [vmem:[%s1692_s1 + $0x184] ss:$8 sps:$4 sm:$0xff]  }
  0x17   :  { %650 = vmatpush1.bf16.msra.mxu0 %v1158_v22  ;;  %v1221_v3 = vld [vmem:[%s1692_s1 + $0x180] ss:$8 sps:$4 sm:$0xff]   ;;  %v1224_v5 = vld [vmem:[%s1692_s1 + $0x274] ss:$8 sps:$4 sm:$0xff]   ;;  %v1222_v8 = vld [vmem:[%s1692_s1 + $0x270] ss:$8 sps:$4 sm:$0xff]  }
  0x18   :  { %651 = vmatprep.subr.bf16.mxu0 %v1162_v23  ;;  %691 = vmatpush1.bf16.msra.mxu1 %v1161_v24  ;;  %v23_v6 = vld [vmem:[%s1693_s0 + $0x10] sm:$0xff]  ;;  %v1227_v9 = vld [vmem:[%s1692_s1 + $0x264] ss:$8 sps:$4 sm:$0xff]   ;;  %v1267_v11 = vld [vmem:[%s1692_s1 + $0x300] ss:$8 sps:$4 sm:$0xff]  }
  0x19   :  { %692 = vmatprep.subr.bf16.mxu1 %v1165_v25  ;;  %v30_v10 = vpack.c.bf16 %v23_v6, %v23_v6  ;;  %v1269_v12 = vld [vmem:[%s1692_s1 + $0x304] ss:$8 sps:$4 sm:$0xff]   ;;  %v1225_v13 = vld [vmem:[%s1692_s1 + $0x260] ss:$8 sps:$4 sm:$0xff]   ;;  %v1230_v15 = vld [vmem:[%s1692_s1 + $0x254] ss:$8 sps:$4 sm:$0xff]  }
  0x1a   :  { %v26_v14 = vld [vmem:[%s1693_s0 + $0x28] sm:$0xff]  ;;  %v27_v18 = vld [vmem:[%s1693_s0 + $0x30] sm:$0xff]  ;;  %v1274_v50 = vld [vmem:[%s1694_s3 + $0x38] sm:$0xff]  }
  0x1b   :  { %652 = vmatpush1.bf16.msra.mxu0 %v1164_v26  ;;  %v33_v16 = vpack.c.bf16 %v26_v14, %v26_v14  ;;  %v1228_v19 = vld [vmem:[%s1692_s1 + $0x250] ss:$8 sps:$4 sm:$0xff]   ;;  %v1233_v20 = vld [vmem:[%s1692_s1 + $0x244] ss:$8 sps:$4 sm:$0xff]   ;;  %v34_v21 = vpack.c.bf16 %v27_v18, %v27_v18  ;;  %v1231_v22 = vld [vmem:[%s1692_s1 + $0x240] ss:$8 sps:$4 sm:$0xff]  }
  0x1c   :  { %653 = vmatprep.subr.bf16.mxu0 %v1168_v27  ;;  %693 = vmatpush1.bf16.msra.mxu1 %v1167_v28  ;;  %v1236_v23 = vld [vmem:[%s1692_s1 + $0x234] ss:$8 sps:$4 sm:$0xff]   ;;  %v1234_v24 = vld [vmem:[%s1692_s1 + $0x230] ss:$8 sps:$4 sm:$0xff]   ;;  %v1239_v25 = vld [vmem:[%s1692_s1 + $0x224] ss:$8 sps:$4 sm:$0xff]  }
  0x1d   :  { %694 = vmatprep.subr.bf16.mxu1 %v1171_v29  ;;  %v1237_v26 = vld [vmem:[%s1692_s1 + $0x220] ss:$8 sps:$4 sm:$0xff]   ;;  %v1242_v27 = vld [vmem:[%s1692_s1 + $0x214] ss:$8 sps:$4 sm:$0xff]   ;;  %v1240_v28 = vld [vmem:[%s1692_s1 + $0x210] ss:$8 sps:$4 sm:$0xff]  }
  0x1e   :  { %v1245_v29 = vld [vmem:[%s1692_s1 + $0x204] ss:$8 sps:$4 sm:$0xff]   ;;  %v1270_v46 = vld [vmem:[%s1692_s1 + $0x280] ss:$8 sps:$4 sm:$0xff]   ;;  %v1276_v52 = vld [vmem:[%s1694_s3 + $0x30] sm:$0xff]  }
  0x1f   :  { %654 = vmatpush1.bf16.msra.mxu0 %v1170_v30  ;;  %v1243_v30 = vld [vmem:[%s1692_s1 + $0x200] ss:$8 sps:$4 sm:$0xff]  }
  0x20   :  { %655 = vmatprep.subr.bf16.mxu0 %v1174_v31  ;;  %695 = vmatpush1.bf16.msra.mxu1 %v1173_v32  ;;  %v1248_v31 = vld [vmem:[%s1692_s1 + $0x2f4] ss:$8 sps:$4 sm:$0xff]   ;;  %v1246_v32 = vld [vmem:[%s1692_s1 + $0x2f0] ss:$8 sps:$4 sm:$0xff]  }
  0x21   :  { %696 = vmatprep.subr.bf16.mxu1 %v1177_v33  ;;  %v1251_v33 = vld [vmem:[%s1692_s1 + $0x2e4] ss:$8 sps:$4 sm:$0xff]  }
  0x23   :  { %656 = vmatpush2.bf16.msra.mxu0 %v1176_v34  ;;  %v1249_v34 = vld [vmem:[%s1692_s1 + $0x2e0] ss:$8 sps:$4 sm:$0xff]  }
  0x24   :  { %657 = vmatprep.subr.bf16.mxu0 %v1180_v35  ;;  %697 = vmatpush2.bf16.msra.mxu1 %v1179_v36  ;;  %v1254_v35 = vld [vmem:[%s1692_s1 + $0x2d4] ss:$8 sps:$4 sm:$0xff]   ;;  %v1252_v36 = vld [vmem:[%s1692_s1 + $0x2d0] ss:$8 sps:$4 sm:$0xff]  }
  0x25   :  { %698 = vmatprep.subr.bf16.mxu1 %v1183_v37  ;;  %v1257_v37 = vld [vmem:[%s1692_s1 + $0x2c4] ss:$8 sps:$4 sm:$0xff]  }
  0x27   :  { %658 = vmatpush2.bf16.msra.mxu0 %v1182_v38  ;;  %v1255_v38 = vld [vmem:[%s1692_s1 + $0x2c0] ss:$8 sps:$4 sm:$0xff]  }
  0x28   :  { %659 = vmatprep.subr.bf16.mxu0 %v1186_v39  ;;  %699 = vmatpush2.bf16.msra.mxu1 %v1185_v40  ;;  %v1260_v39 = vld [vmem:[%s1692_s1 + $0x2b4] ss:$8 sps:$4 sm:$0xff]   ;;  %v1258_v40 = vld [vmem:[%s1692_s1 + $0x2b0] ss:$8 sps:$4 sm:$0xff]  }
  0x29   :  { %700 = vmatprep.subr.bf16.mxu1 %v1189_v41  ;;  %v1263_v41 = vld [vmem:[%s1692_s1 + $0x2a4] ss:$8 sps:$4 sm:$0xff]  }
  0x2b   :  { %660 = vmatpush2.bf16.msra.mxu0 %v1188_v42  ;;  %v1261_v42 = vld [vmem:[%s1692_s1 + $0x2a0] ss:$8 sps:$4 sm:$0xff]  }
  0x2c   :  { %661 = vmatprep.subr.bf16.mxu0 %v1192_v43  ;;  %701 = vmatpush2.bf16.msra.mxu1 %v1191_v44  ;;  %v1266_v43 = vld [vmem:[%s1692_s1 + $0x294] ss:$8 sps:$4 sm:$0xff]   ;;  %v1264_v44 = vld [vmem:[%s1692_s1 + $0x290] ss:$8 sps:$4 sm:$0xff]  }
  0x2d   :  { %702 = vmatprep.subr.bf16.mxu1 %v1195_v45  ;;  %v1272_v45 = vld [vmem:[%s1692_s1 + $0x284] ss:$8 sps:$4 sm:$0xff]  }
  0x2f   :  { %662 = vmatpush2.bf16.msra.mxu0 %v1194_v47  ;;  %v25_v47 = vld [vmem:[%s1693_s0 + $0x20] sm:$0xff] }
  0x30   :  { %663 = vmatprep.subr.bf16.mxu0 %v1198_v49  ;;  %703 = vmatpush2.bf16.msra.mxu1 %v1197_v51  ;;  %v32_v48 = vpack.c.bf16 %v25_v47, %v25_v47  ;;  %v1273_v49 = vld [vmem:[%s1694_s3 + $0x78] sm:$0xff]   ;;  %v1275_v51 = vld [vmem:[%s1694_s3 + $0x70] sm:$0xff]  }
  0x31   :  { %704 = vmatprep.subr.bf16.mxu1 %v1201_v53  ;;  %v1277_v53 = vld [vmem:[%s1694_s3 + $0x68] sm:$0xff]  }
  0x33   :  { %664 = vmatpush2.bf16.msra.mxu0 %v1200_v54  ;;  %v1278_v54 = vld [vmem:[%s1694_s3 + $0x28] sm:$0xff]  }
  0x34   :  { %665 = vmatprep.subr.bf16.mxu0 %v1204_v55  ;;  %705 = vmatpush2.bf16.msra.mxu1 %v1203_v56  ;;  %v1279_v55 = vld [vmem:[%s1694_s3 + $0x60] sm:$0xff]  }
  0x35   :  { %706 = vmatprep.subr.bf16.mxu1 %v1207_v57  ;;  %v1280_v56 = vld [vmem:[%s1694_s3 + $0x20] sm:$0xff]   ;;  %v1281_v57 = vld [vmem:[%s1694_s3 + $0x58] sm:$0xff]  }
  0x37   :  { %666 = vmatpush2.bf16.msra.mxu0 %v1206_v58  ;;  %v1282_v58 = vld [vmem:[%s1694_s3 + $0x18] sm:$0xff]  }
  0x38   :  { %667 = vmatprep.subr.bf16.mxu0 %v1210_v59  ;;  %707 = vmatpush2.bf16.msra.mxu1 %v1209_v60  ;;  %v1283_v59 = vld [vmem:[%s1694_s3 + $0x50] sm:$0xff]  }
  0x39   :  { %708 = vmatprep.subr.bf16.mxu1 %v1213_v61  ;;  %v1284_v60 = vld [vmem:[%s1694_s3 + $0x10] sm:$0xff]   ;;  %v1285_v61 = vld [vmem:[%s1694_s3 + $0x48] sm:$0xff]  }
  0x3b   :  { %668 = vmatpush2.bf16.msra.mxu0 %v1212_v62  ;;  %v1286_v62 = vld [vmem:[%s1694_s3 + $0x8] sm:$0xff]  }
  0x3c   :  { %669 = vmatprep.subr.bf16.mxu0 %v1216_v63  ;;  %709 = vmatpush2.bf16.msra.mxu1 %v1215_v0  ;;  %v1287_v63 = vld [vmem:[%s1694_s3 + $0x40] sm:$0xff]  }
  0x3d   :  { %710 = vmatprep.subr.bf16.mxu1 %v1219_v2  ;;  %v1288_v0 = vld [vmem:[%s1694_s3] sm:$0xff]  }
  0x3f   :  { %670 = vmatpush2.bf16.msra.mxu0 %v1218_v1 }
  0x40   :  { %721 = vmatprep.subr.bf16.mxu0 %v1224_v5  ;;  %711 = vmatpush2.bf16.msra.mxu1 %v1221_v3 }
  0x41   :  { %776 = vmatprep.subr.bf16.mxu1 %v1269_v12 }
  0x42   :  { %672 = vmatmul.mubr.bf16.vlgmr.msra.gmra.mxu0 %v28_v7 }
  0x43   :  { %722 = vmatpush1.bf16.msra.mxu0 %v1222_v8  ;;  %713 = vmatmul.mubr.bf16.vlgmr.msra.gmra.mxu1 %v30_v10 }
  0x44   :  { %723 = vmatprep.subr.bf16.mxu0 %v1227_v9  ;;  %777 = vmatpush1.bf16.msra.mxu1 %v1267_v11 }
  0x45   :  { %794 = vmatprep.mubr.bf16.mxu1 %v1289_v17  ;;  %753 = vmatprep.mubr.bf16.mxu0 %v33_v16  ;;  %v133_v16 = vld [vmem:[%s1695_s2] sm:$0x3] }
  0x46   :  { %1103 = vmatprep.subr.bf16.mxu1 %v1273_v49 }
  0x47   :  { %724 = vmatpush1.bf16.msra.mxu0 %v1225_v13  ;;  %v135_v13 = vlaneseq }
  0x48   :  { %725 = vmatprep.subr.bf16.mxu0 %v1230_v15 }
  0x49   :  { %v136_v14 = vshrl.u32 %v135_v13, 7 }
  0x4b   :  { %726 = vmatpush1.bf16.msra.mxu0 %v1228_v19  ;;  %1085 = vmatmul.mubr.msk.bf16.vlgmr.msra.gmra.mxu1 %vm635_vm0, %v34_v21  ;;  %v137_v15 = vsub.s32 0, %v136_v14  ;;  %v141_v17 = vsub.s32 1, %v136_v14 }
  0x4c   :  { %727 = vmatprep.subr.bf16.mxu0 %v1233_v20  ;;  %1104 = vmatpush3.bf16.msra.mxu1 %v1274_v50 }
  0x4d   :  { %1105 = vmatprep.subr.bf16.mxu1 %v1275_v51  ;;  %v138_v18 = vrot.slane %v133_v16, %v137_v15  ;;  %v142_v19 = vrot.slane %v133_v16, %v141_v17 }
  0x4f   :  { %728 = vmatpush1.bf16.msra.mxu0 %v1231_v22 }
  0x50   :  { %729 = vmatprep.subr.bf16.mxu0 %v1236_v23  ;;  %1106 = vmatpush3.bf16.msra.mxu1 %v1276_v52 }
  0x51   :  { %1107 = vmatprep.subr.bf16.mxu1 %v1277_v53 }
  0x53   :  { %730 = vmatpush1.bf16.msra.mxu0 %v1234_v24 }
  0x54   :  { %731 = vmatprep.subr.bf16.mxu0 %v1239_v25  ;;  %1108 = vmatpush3.bf16.msra.mxu1 %v1278_v54 }
  0x55   :  { %1109 = vmatprep.subr.bf16.mxu1 %v1279_v55 }
  0x57   :  { %732 = vmatpush1.bf16.msra.mxu0 %v1237_v26 }
  0x58   :  { %733 = vmatprep.subr.bf16.mxu0 %v1242_v27  ;;  %1110 = vmatpush3.bf16.msra.mxu1 %v1280_v56 }
  0x59   :  { %1111 = vmatprep.subr.bf16.mxu1 %v1281_v57 }
  0x5b   :  { %734 = vmatpush1.bf16.msra.mxu0 %v1240_v28 }
  0x5c   :  { %735 = vmatprep.subr.bf16.mxu0 %v1245_v29  ;;  %1112 = vmatpush3.bf16.msra.mxu1 %v1282_v58 }
  0x5d   :  { %1113 = vmatprep.subr.bf16.mxu1 %v1283_v59 }
  0x5f   :  { %736 = vmatpush1.bf16.msra.mxu0 %v1243_v30 }
  0x60   :  { %737 = vmatprep.subr.bf16.mxu0 %v1248_v31  ;;  %1114 = vmatpush3.bf16.msra.mxu1 %v1284_v60 }
  0x61   :  { %1115 = vmatprep.subr.bf16.mxu1 %v1285_v61 }
  0x63   :  { %738 = vmatpush2.bf16.msra.mxu0 %v1246_v32 }
  0x64   :  { %739 = vmatprep.subr.bf16.mxu0 %v1251_v33  ;;  %1116 = vmatpush3.bf16.msra.mxu1 %v1286_v62 }
  0x65   :  { %1117 = vmatprep.subr.bf16.mxu1 %v1287_v63 }
  0x67   :  { %740 = vmatpush2.bf16.msra.mxu0 %v1249_v34 }
  0x68   :  { %741 = vmatprep.subr.bf16.mxu0 %v1254_v35  ;;  %1118 = vmatpush3.bf16.msra.mxu1 %v1288_v0 }
  0x6b   :  { %742 = vmatpush2.bf16.msra.mxu0 %v1252_v36 }
  0x6c   :  { %743 = vmatprep.subr.bf16.mxu0 %v1257_v37  ;;  %v1086_v37 = vld [vmem:[%s1696_s4] ss:$0 sm:$0xff] }
  0x6f   :  { %744 = vmatpush2.bf16.msra.mxu0 %v1255_v38 }
  0x70   :  { %745 = vmatprep.subr.bf16.mxu0 %v1260_v39 }
  0x73   :  { %746 = vmatpush2.bf16.msra.mxu0 %v1258_v40 }
  0x74   :  { %747 = vmatprep.subr.bf16.mxu0 %v1263_v41 }
  0x77   :  { %748 = vmatpush2.bf16.msra.mxu0 %v1261_v42 }
  0x78   :  { %749 = vmatprep.subr.bf16.mxu0 %v1266_v43 }
  0x7b   :  { %750 = vmatpush2.bf16.msra.mxu0 %v1264_v44 }
  0x7c   :  { %751 = vmatprep.subr.bf16.mxu0 %v1272_v45 }
  0x7f   :  { %752 = vmatpush2.bf16.msra.mxu0 %v1270_v46 }
  0x82   :  { %754 = vmatmul.mubr.bf16.vlgmr.msra.gmra.mxu0 %v32_v48 }
 0x102   :  { %v673_v1 = vpop.f32.mrf.mxu0 }
 0x103   :  { %v714_v3 = vpop.f32.mrf.mxu1  ;;  %v674_v20 = vadd.f32 %v673_v1, %v138_v18 }
 0x104   :  { %v675_v2 = vpop.f32.mrf.mxu0 }
 0x105   :  { %v716_v5 = vpop.f32.mrf.mxu1  ;;  %v676_v21 = vadd.f32 %v675_v2, %v142_v19  ;;  %v715_v22 = vadd.f32 %v714_v3, %v674_v20 }
 0x106   :  { %v677_v4 = vpop.f32.mrf.mxu0 }
 0x107   :  { %v718_v7 = vpop.f32.mrf.mxu1  ;;  %v717_v24 = vadd.f32 %v716_v5, %v676_v21 }
 0x108   :  { %v678_v6 = vpop.f32.mrf.mxu0 }
 0x109   :  { %v719_v8 = vpop.f32.mrf.mxu1 }
 0x10b   :  { %v796_v9 = vpop.f32.mrf.mxu1 }
 0x10d   :  { %v798_v10 = vpop.f32.mrf.mxu1 }
 0x10f   :  { %v800_v11 = vpop.f32.mrf.mxu1 }
 0x111   :  { %v801_v12 = vpop.f32.mrf.mxu1 }
 0x142   :  { %v755_v23 = vpop.f32.mrf.mxu0 }
 0x143   :  { %v756_v25 = vadd.f32 %v755_v23, %v715_v22 }
 0x144   :  { %v757_v26 = vpop.f32.mrf.mxu0 }
 0x145   :  { %v797_v27 = vadd.f32 %v796_v9, %v756_v25  ;;  %v758_v28 = vadd.f32 %v757_v26, %v717_v24 }
 0x146   :  { %v759_v29 = vpop.f32.mrf.mxu0 }
 0x147   :  { %v799_v30 = vadd.f32 %v798_v10, %v758_v28  ;;  %v803_v31 = vmax.f32 %v797_v27, 0.0 }
 0x148   :  { %v760_v32 = vpop.f32.mrf.mxu0 }
 0x149   :  { %v804_v33 = vmax.f32 %v799_v30, 0.0  ;;  %v805_v35 = vpack.c.bf16 %v803_v31, %v803_v31 }
 0x14b   :  { %v806_v34 = vpack.c.bf16 %v804_v33, %v804_v33 }
 0x14d   :  { %974 = vmatprep.mubr.bf16.mxu1 %v806_v34 }
 0x14e   :  { %975 = vmatmul.mubr.bf16.vlgmr.msra.gmra.mxu1 %v805_v35 }
 0x20e   :  { %v1119_v36 = vpop.f32.mrf.mxu1 }
 0x210   :  { %v1120_v38 = vpop.f32.mrf.mxu1 }
 0x211   :  { %v1121_v39 = vadd.f32 %v1120_v38, %v1119_v36 }
 0x212   :  { %v1122_v40 = vpop.f32.mrf.mxu1 }
 0x213   :  { %v977_v41 = vadd.f32 %v1121_v39, %v1086_v37 }
 0x214   :  { %v1123_v42 = vpop.f32.mrf.mxu1 }
 0x215   :  { %982 = vst [vmem:[%s1697_s5] sm:$0xff] %v977_v41 }

</bundles_post_ra>
